<compile_context>
chip_gen: v7x
topology: tpu7x:2x2x1
jax: 0.10.0
libtpu: 0.0.40
codegen_flags: <defaults>
</compile_context>

<pallas_src>
import math

import jax
import jax.numpy as jnp
from jax.experimental import pallas as pl
from jax.experimental.pallas import tpu as pltpu


def _dma_copy_kernel(x_hbm, o_hbm, sem):
    # Single whole-array HBM->HBM DMA: no VMEM staging, no grid steps.
    cp = pltpu.make_async_copy(x_hbm, o_hbm, sem)
    cp.start()
    cp.wait()


def _normalize_dim(dim, ndim):
    if dim < 0:
        dim += ndim
    assert 0 <= dim < ndim, (dim, ndim)
    return dim


def squeeze(x, dim):
    """Fast path: zero-cost metadata squeeze (no kernel, no HBM traffic)."""
    dim = _normalize_dim(dim, x.ndim)
    if x.shape[dim] != 1:
        # PyTorch semantics: squeezing a size!=1 dim is a no-op.
        return x
    return jnp.squeeze(x, axis=dim)


def squeeze_pallas(x, dim):
    """Squeeze via one direct HBM->HBM DMA inside a Pallas kernel."""
    dim = _normalize_dim(dim, x.ndim)
    if x.shape[dim] != 1:
        # No-op path: return the input directly, no kernel, no copy.
        return x

    out_shape = x.shape[:dim] + x.shape[dim + 1:]

    # Degenerate cases (0-d result or empty array): metadata squeeze only.
    if len(out_shape) == 0 or math.prod(out_shape) == 0:
        return jnp.squeeze(x, axis=dim)

    # Metadata-only reshape: dropping a size-1 dim preserves row-major order,
    # so source and destination of the DMA share the same (squeezed) shape.
    x_sq = jnp.reshape(x, out_shape)

    itemsize = x.dtype.itemsize
    return pl.pallas_call(
        _dma_copy_kernel,
        out_shape=jax.ShapeDtypeStruct(out_shape, x.dtype),
        in_specs=[pl.BlockSpec(memory_space=pl.ANY)],
        out_specs=pl.BlockSpec(memory_space=pl.ANY),
        scratch_shapes=[pltpu.SemaphoreType.DMA(())],
        cost_estimate=pl.CostEstimate(
            flops=0,
            transcendentals=0,
            bytes_accessed=2 * x.size * itemsize),
    )(x_sq)


if __name__ == "__main__":
    key = jax.random.PRNGKey(0)

    # Squeeze(dim=1) applied to an NCHW tensor with C=1 (small shape).
    x = jax.random.normal(key, (2, 1, 16, 128), dtype=jnp.float32)
    expected = jnp.squeeze(x, axis=1)

    # 1) Pallas direct-DMA path.
    out = jax.block_until_ready(squeeze_pallas(x, dim=1))
    assert out.shape == expected.shape, (out.shape, expected.shape)
    assert out.dtype == expected.dtype
    assert bool(jnp.array_equal(out, expected))

    # 2) Preferred zero-cost metadata path.
    out_fast = jax.block_until_ready(squeeze(x, dim=1))
    assert out_fast.shape == expected.shape
    assert bool(jnp.array_equal(out_fast, expected))

    # 3) No-op path (size != 1 at dim): returns the input, no kernel launch.
    y = jax.random.normal(jax.random.PRNGKey(1), (2, 4, 16, 128), jnp.float32)
    out_noop = jax.block_until_ready(squeeze_pallas(y, dim=1))
    assert out_noop.shape == y.shape
    assert bool(jnp.array_equal(out_noop, y))

    # 4) Negative dim handling (squeezed dim is the last / lane dim).
    z = jax.random.normal(jax.random.PRNGKey(2), (2, 16, 128, 1), jnp.float32)
    out_neg = jax.block_until_ready(squeeze_pallas(z, dim=-1))
    assert out_neg.shape == (2, 16, 128)
    assert bool(jnp.array_equal(out_neg, jnp.squeeze(z, axis=-1)))

    # 5) bf16 input (packed dtype) through the DMA path.
    w = jax.random.normal(jax.random.PRNGKey(3), (1, 8, 256), jnp.float32)
    w = w.astype(jnp.bfloat16)
    out_bf16 = jax.block_until_ready(squeeze_pallas(w, dim=0))
    assert out_bf16.shape == (8, 256)
    assert out_bf16.dtype == jnp.bfloat16
    assert bool(jnp.array_equal(out_bf16, jnp.squeeze(w, axis=0)))

    print("KERNEL_OK")
</pallas_src>

<mosaic_0001>
module attributes {stable_mosaic.version = 11 : i64} {
  func.func @_dma_copy_kernel(%arg0: memref<2x16x128xf32, #tpu.memory_space<any>>, %arg1: memref<2x16x128xf32, #tpu.memory_space<any>>, %arg2: memref<!tpu.dma_semaphore, #tpu.memory_space<semaphore_mem>>) attributes {dimension_semantics = [], scalar_prefetch = 0 : i64, scratch_operands = 1 : i64, tpu.core_type = #tpu.core_type<tc>} {
    tpu.enqueue_dma source(%arg0 : memref<2x16x128xf32, #tpu.memory_space<any>>) target(%arg1 : memref<2x16x128xf32, #tpu.memory_space<any>>) target_semaphore(%arg2 : memref<!tpu.dma_semaphore, #tpu.memory_space<semaphore_mem>>)
    tpu.wait_dma2 semaphore(%arg2 : memref<!tpu.dma_semaphore, #tpu.memory_space<semaphore_mem>>) src(%arg0 : memref<2x16x128xf32, #tpu.memory_space<any>>) dst(%arg1 : memref<2x16x128xf32, #tpu.memory_space<any>>)
    return
  }
}

</mosaic_0001>

<bundles_post_ra>
// kernel: tpu_custom_call.1
= control target key start
LH: loop header
LB: loop body
LE: loop exit
PB: predicated region body
PF: predicated region fallthrough
CT: control target
= control target key end

     0   :  { %s35_s6 = smov [#allocation2]   ;;  %s36_s7 = smov [#allocation3]   ;;  %s54_s0 = inlined_call_operand.hbm [shape: f32[2,16,128], index: 0, kind: input, shape index: {}]   ;;  %s55_s1 = inlined_call_operand.hbm [shape: f32[2,16,128], index: 1, kind: output, shape index: {}]  }
   0x1   :  { %s37_s8 = smov 0  }
   0x2   :  { %18 = dma.general %s54_s0, 512, %s55_s1, %s35_s6, %s36_s7, [#allocation4], %s37_s8, 0  }
   0x3   :  { %33 = dma.done.wait [#allocation2], 512 }
   0x4   :  { %34 = vsyncadd [#allocation2], 4294966784 }
   0x5   :  { %23 = vsyncmov [#allocation2] }
   0x8   :  { %s24_s13 = vpop.sfrf %23 }
   0x9   :  { %p29_p0 = scmp.ne.s32.totalorder %s24_s13, 0 }
   0xb   :  { %28 = shalt.err (%p29_p0)  }

</bundles_post_ra>
